<compile_context>
chip_gen: v7x
topology: tpu7x:2x2x1
jax: 0.10.0
libtpu: 0.0.40
codegen_flags: <defaults>
</compile_context>

<pallas_src>
import functools

import numpy as np
import jax
import jax.numpy as jnp
from jax.experimental import pallas as pl
from jax.experimental.pallas import tpu as pltpu

_NEG_MASK = -1e30  # baked into block-C bias for lanes outside the probs window


def _round_up(x, m):
    return ((x + m - 1) // m) * m


def _feedforward_kernel(x_ref, slab_ref, out_ref, *,
                        d_pad, lstm_h, n_hidden_pad,
                        ga_cols, outw, bias_row):
    x = x_ref[...]                                               # (1, d_pad) f32
    H = lstm_h

    # ---- single-step LSTM (h0 = c0 = 0): gates = x @ [Wi|Wg|Wo]^T + fused bias.
    #      Forget gate omitted (it multiplies c0 == 0 and drops out of the math).
    wa = slab_ref[0:d_pad, 0:ga_cols]                            # (d_pad, ga_cols)
    ba = slab_ref[bias_row:bias_row + 1, 0:ga_cols]              # (1, ga_cols)
    gates = jnp.dot(x, wa, preferred_element_type=jnp.float32) + ba
    i_g = jax.nn.sigmoid(gates[:, 0 * H:1 * H])
    g_g = jnp.tanh(gates[:, 1 * H:2 * H])
    o_g = jax.nn.sigmoid(gates[:, 2 * H:3 * H])
    h = o_g * jnp.tanh(i_g * g_g)                                # (1, H)  (c = i*g)

    # ---- Linear + ReLU (valid lanes [0, n_hidden); zero-padded elsewhere) ----
    c0 = ga_cols
    wb = slab_ref[0:H, c0:c0 + outw]                             # (H, outw)
    bb = slab_ref[bias_row:bias_row + 1, c0:c0 + outw]
    hid_full = jnp.maximum(
        jnp.dot(h, wb, preferred_element_type=jnp.float32) + bb, 0.0)   # (1, outw)

    # ---- Linear + softmax; W2 columns are pre-shifted in the slab so logits land
    #      directly in lanes [n_hidden, n_hidden + n_out) of the output slab, and
    #      all other lanes carry a -1e30 bias -> exp underflows to exactly 0. ----
    c1 = ga_cols + outw
    wc = slab_ref[0:n_hidden_pad, c1:c1 + outw]                  # (nh_pad, outw)
    bc = slab_ref[bias_row:bias_row + 1, c1:c1 + outw]
    hid = hid_full[:, 0:n_hidden_pad]                            # (1, nh_pad)
    logits = jnp.dot(hid, wc, preferred_element_type=jnp.float32) + bc  # (1, outw)

    m = jnp.max(logits, axis=-1, keepdims=True)
    e = jnp.exp(logits - m)                                      # masked lanes -> 0
    inv = pl.reciprocal(jnp.sum(e, axis=-1, keepdims=True), approx=False)
    probs_full = e * inv                                         # (1, outw)

    # hid_full is zero on lanes >= n_hidden; probs_full is zero outside
    # [n_hidden, n_hidden + n_out)  ->  one dense add, one unmasked full store.
    out_ref[...] = hid_full + probs_full


def _forward_impl(slab, input_state, sampled_values, *,
                  d_in, d_pad, lstm_h, n_hidden, n_hidden_pad, n_out,
                  ga_cols, outw, bias_row):
    x = jnp.concatenate(list(sampled_values) + [input_state], axis=0)
    x = x.astype(jnp.float32)
    x2d = jnp.pad(x, (0, d_pad - d_in)).reshape(1, d_pad)

    kernel = functools.partial(
        _feedforward_kernel, d_pad=d_pad, lstm_h=lstm_h,
        n_hidden_pad=n_hidden_pad, ga_cols=ga_cols, outw=outw, bias_row=bias_row)

    vmem = pl.BlockSpec(memory_space=pltpu.MemorySpace.VMEM)
    out = pl.pallas_call(
        kernel,
        out_shape=jax.ShapeDtypeStruct((1, outw), jnp.float32),
        in_specs=[vmem, vmem],
        out_specs=vmem,
    )(x2d, slab)

    hidden = out[0, 0:n_hidden]
    probs = out[0, n_hidden:n_hidden + n_out]
    return hidden, probs


class FeedForwardLayerPallas:
    """Parameter container + jitted Pallas forward matching torch FeedForwardLayer."""

    def __init__(self, num_inputs, num_outputs, num_extra_inputs=None,
                 num_hidden=None, num_lstm_hidden=None,
                 bidirectionalembedding=False, key=None):
        if num_hidden is None:
            num_hidden = num_inputs
        if num_lstm_hidden is None:
            num_lstm_hidden = num_hidden
        if num_extra_inputs is not None:
            num_inputs += num_extra_inputs
        if bidirectionalembedding:
            # TODO(synk): bidirectional single-step LSTM (concat fwd/bwd hidden) not implemented
            raise NotImplementedError("bidirectional embedding not supported")

        self.num_inputs = num_inputs
        self.num_hidden = num_hidden
        self.num_lstm_hidden = num_lstm_hidden
        self.num_outputs = num_outputs

        key = jax.random.PRNGKey(0) if key is None else key
        ks = jax.random.split(key, 7)
        H = num_lstm_hidden

        # deterministic init mimicking torch's uniform(-1/sqrt(fan), 1/sqrt(fan))
        bl = 1.0 / np.sqrt(H)
        self.w_ih = jax.random.uniform(ks[0], (4 * H, num_inputs), jnp.float32, -bl, bl)
        self.b_ih = jax.random.uniform(ks[1], (4 * H,), jnp.float32, -bl, bl)
        self.b_hh = jax.random.uniform(ks[2], (4 * H,), jnp.float32, -bl, bl)
        # (w_hh exists in torch but multiplies h0 == 0, so it never affects the output)

        b1 = 1.0 / np.sqrt(H)
        self.w1 = jax.random.uniform(ks[3], (num_hidden, H), jnp.float32, -b1, b1)
        self.b1 = jax.random.uniform(ks[4], (num_hidden,), jnp.float32, -b1, b1)

        b2 = 1.0 / np.sqrt(num_hidden)
        self.w2 = jax.random.uniform(ks[5], (num_outputs, num_hidden), jnp.float32, -b2, b2)
        self.b2 = jax.random.uniform(ks[6], (num_outputs,), jnp.float32, -b2, b2)

        # ---- init-time packing: transposed weights + fused biases in ONE f32 slab ----
        d_pad = _round_up(num_inputs, 8)
        n_hidden_pad = _round_up(num_hidden, 8)
        ga_cols = _round_up(3 * H, 128)                       # i | g | o (no forget gate)
        outw = _round_up(num_hidden + num_outputs, 128)
        bias_row = _round_up(max(d_pad, H, n_hidden_pad), 8)
        rows = bias_row + 8

        w_ih = np.asarray(self.w_ih)
        b_a = np.asarray(self.b_ih + self.b_hh)

        slab = np.zeros((rows, ga_cols + 2 * outw), np.float32)
        # block A: LSTM input->gates (i, g, o only); fused bias (b_ih + b_hh) in bias_row.
        # torch gate order in w_ih is [i, f, g, o] of size H each.
        slab[0:num_inputs, 0 * H:1 * H] = w_ih[0 * H:1 * H].T          # i
        slab[0:num_inputs, 1 * H:2 * H] = w_ih[2 * H:3 * H].T          # g
        slab[0:num_inputs, 2 * H:3 * H] = w_ih[3 * H:4 * H].T          # o
        slab[bias_row, 0 * H:1 * H] = b_a[0 * H:1 * H]
        slab[bias_row, 1 * H:2 * H] = b_a[2 * H:3 * H]
        slab[bias_row, 2 * H:3 * H] = b_a[3 * H:4 * H]
        # block B: Linear(H -> num_hidden)
        slab[0:H, ga_cols:ga_cols + num_hidden] = np.asarray(self.w1).T
        slab[bias_row, ga_cols:ga_cols + num_hidden] = np.asarray(self.b1)
        # block C: Linear(num_hidden -> num_outputs), columns shifted by num_hidden
        # so the softmax output lands directly in lanes [nh, nh+no) of out.
        # Bias on all other block-C lanes is -1e30 -> exp() underflows to 0 in-kernel.
        c1 = ga_cols + outw
        slab[bias_row, c1:c1 + outw] = _NEG_MASK
        slab[0:num_hidden, c1 + num_hidden:c1 + num_hidden + num_outputs] = np.asarray(self.w2).T
        slab[bias_row, c1 + num_hidden:c1 + num_hidden + num_outputs] = np.asarray(self.b2)
        self._slab = jnp.asarray(slab)

        self._forward = jax.jit(functools.partial(
            _forward_impl, d_in=num_inputs, d_pad=d_pad, lstm_h=H,
            n_hidden=num_hidden, n_hidden_pad=n_hidden_pad, n_out=num_outputs,
            ga_cols=ga_cols, outw=outw, bias_row=bias_row))

    def __call__(self, input_state, sampled_values=()):
        # TODO(synk): batched multi-state forward (grid over a batch axis with the
        # weight slab VMEM-resident and dimension_semantics=("parallel",)) is the
        # next step if the RL loop ever evaluates many states at once; the torch
        # module is single-state, so semantics are kept single-state here.
        return self._forward(self._slab, input_state, tuple(sampled_values))


def _reference_forward(layer, input_state, sampled_values):
    """Pure-JAX reference of the exact torch forward math."""
    x = jnp.concatenate(list(sampled_values) + [input_state], axis=0)
    gates = layer.w_ih @ x + layer.b_ih + layer.b_hh
    H = layer.num_lstm_hidden
    i = jax.nn.sigmoid(gates[0 * H:1 * H])
    g = jnp.tanh(gates[2 * H:3 * H])
    o = jax.nn.sigmoid(gates[3 * H:4 * H])
    h = o * jnp.tanh(i * g)
    hid = jnp.maximum(layer.w1 @ h + layer.b1, 0.0)
    probs = jax.nn.softmax(layer.w2 @ hid + layer.b2, axis=-1)
    return hid, probs


if __name__ == "__main__":
    key = jax.random.PRNGKey(0)
    k_param, k_in, k_s1, k_s2 = jax.random.split(key, 4)

    num_inputs, num_outputs, num_extra = 16, 6, 8   # total LSTM input dim = 24, hidden = 16
    layer = FeedForwardLayerPallas(num_inputs, num_outputs,
                                   num_extra_inputs=num_extra, key=k_param)

    input_state = jax.random.normal(k_in, (num_inputs,), jnp.float32)
    sampled_values = [jax.random.normal(k_s1, (4,), jnp.float32),
                      jax.random.normal(k_s2, (4,), jnp.float32)]

    hidden, probs = layer(input_state, sampled_values)
    jax.block_until_ready((hidden, probs))

    hid_ref, probs_ref = _reference_forward(layer, input_state, sampled_values)
    np.testing.assert_allclose(np.asarray(hidden), np.asarray(hid_ref), rtol=1e-5, atol=1e-5)
    np.testing.assert_allclose(np.asarray(probs), np.asarray(probs_ref), rtol=1e-5, atol=1e-5)
    assert hidden.shape == (layer.num_hidden,) and probs.shape == (num_outputs,)
    np.testing.assert_allclose(float(jnp.sum(probs)), 1.0, rtol=1e-5)

    print("KERNEL_OK")
</pallas_src>

<mosaic_0001>
module attributes {stable_mosaic.version = 11 : i64} {
  func.func @_feedforward_kernel(%arg0: memref<1x24xf32, #tpu.memory_space<vmem>>, %arg1: memref<32x384xf32, #tpu.memory_space<vmem>>, %arg2: memref<1x128xf32, #tpu.memory_space<vmem>>) attributes {dimension_semantics = [], scalar_prefetch = 0 : i64, scratch_operands = 0 : i64, tpu.core_type = #tpu.core_type<tc>} {
    %c0 = arith.constant 0 : index
    %c0_0 = arith.constant 0 : index
    %0 = vector.load %arg0[%c0, %c0_0] : memref<1x24xf32, #tpu.memory_space<vmem>>, vector<1x24xf32>
    %c0_1 = arith.constant 0 : index
    %c0_2 = arith.constant 0 : index
    %1 = vector.load %arg1[%c0_1, %c0_2] : memref<32x384xf32, #tpu.memory_space<vmem>>, vector<24x128xf32>
    %c24 = arith.constant 24 : index
    %c0_3 = arith.constant 0 : index
    %2 = vector.load %arg1[%c24, %c0_3] : memref<32x384xf32, #tpu.memory_space<vmem>>, vector<1x128xf32>
    %cst = arith.constant dense<0.000000e+00> : vector<1x128xf32>
    %3 = tpu.matmul %0, %1, %cst {dimension_numbers = #tpu.dot_dimension_numbers<[1], [0], [0], [1], [0, 0, 1, 1], [], []>} : vector<1x24xf32>, vector<24x128xf32>, vector<1x128xf32> -> vector<1x128xf32>
    %4 = arith.addf %3, %2 : vector<1x128xf32>
    %5 = vector.extract_strided_slice %4 {offsets = [0, 0], sizes = [1, 16], strides = [1, 1]} : vector<1x128xf32> to vector<1x16xf32>
    %6 = arith.negf %5 : vector<1x16xf32>
    %7 = math.exp %6 : vector<1x16xf32>
    %cst_4 = arith.constant 1.000000e+00 : f32
    %8 = vector.broadcast %cst_4 : f32 to vector<1x16xf32>
    %9 = arith.addf %8, %7 : vector<1x16xf32>
    %10 = arith.divf %8, %9 : vector<1x16xf32>
    %11 = vector.extract_strided_slice %4 {offsets = [0, 16], sizes = [1, 16], strides = [1, 1]} : vector<1x128xf32> to vector<1x16xf32>
    %12 = math.tanh %11 : vector<1x16xf32>
    %13 = vector.extract_strided_slice %4 {offsets = [0, 32], sizes = [1, 16], strides = [1, 1]} : vector<1x128xf32> to vector<1x16xf32>
    %14 = arith.negf %13 : vector<1x16xf32>
    %15 = math.exp %14 : vector<1x16xf32>
    %cst_5 = arith.constant 1.000000e+00 : f32
    %16 = vector.broadcast %cst_5 : f32 to vector<1x16xf32>
    %17 = arith.addf %16, %15 : vector<1x16xf32>
    %18 = arith.divf %16, %17 : vector<1x16xf32>
    %19 = arith.mulf %10, %12 : vector<1x16xf32>
    %20 = math.tanh %19 : vector<1x16xf32>
    %21 = arith.mulf %18, %20 : vector<1x16xf32>
    %c0_6 = arith.constant 0 : index
    %c128 = arith.constant 128 : index
    %22 = vector.load %arg1[%c0_6, %c128] : memref<32x384xf32, #tpu.memory_space<vmem>>, vector<16x128xf32>
    %c24_7 = arith.constant 24 : index
    %c128_8 = arith.constant 128 : index
    %23 = vector.load %arg1[%c24_7, %c128_8] : memref<32x384xf32, #tpu.memory_space<vmem>>, vector<1x128xf32>
    %cst_9 = arith.constant dense<0.000000e+00> : vector<1x128xf32>
    %24 = tpu.matmul %21, %22, %cst_9 {dimension_numbers = #tpu.dot_dimension_numbers<[1], [0], [0], [1], [0, 0, 1, 1], [], []>} : vector<1x16xf32>, vector<16x128xf32>, vector<1x128xf32> -> vector<1x128xf32>
    %25 = arith.addf %24, %23 : vector<1x128xf32>
    %cst_10 = arith.constant 0.000000e+00 : f32
    %26 = vector.broadcast %cst_10 : f32 to vector<1x128xf32>
    %27 = arith.maximumf %25, %26 : vector<1x128xf32>
    %c0_11 = arith.constant 0 : index
    %c256 = arith.constant 256 : index
    %28 = vector.load %arg1[%c0_11, %c256] : memref<32x384xf32, #tpu.memory_space<vmem>>, vector<16x128xf32>
    %c24_12 = arith.constant 24 : index
    %c256_13 = arith.constant 256 : index
    %29 = vector.load %arg1[%c24_12, %c256_13] : memref<32x384xf32, #tpu.memory_space<vmem>>, vector<1x128xf32>
    %30 = vector.extract_strided_slice %27 {offsets = [0, 0], sizes = [1, 16], strides = [1, 1]} : vector<1x128xf32> to vector<1x16xf32>
    %cst_14 = arith.constant dense<0.000000e+00> : vector<1x128xf32>
    %31 = tpu.matmul %30, %28, %cst_14 {dimension_numbers = #tpu.dot_dimension_numbers<[1], [0], [0], [1], [0, 0, 1, 1], [], []>} : vector<1x16xf32>, vector<16x128xf32>, vector<1x128xf32> -> vector<1x128xf32>
    %32 = arith.addf %31, %29 : vector<1x128xf32>
    %cst_15 = arith.constant dense<0xFF800000> : vector<1xf32>
    %33 = vector.multi_reduction <maximumf>, %32, %cst_15 [1] : vector<1x128xf32> to vector<1xf32>
    %34 = vector.shape_cast %33 : vector<1xf32> to vector<1x1xf32>
    %35 = vector.broadcast %34 : vector<1x1xf32> to vector<1x128xf32>
    %36 = arith.subf %32, %35 : vector<1x128xf32>
    %37 = math.exp %36 : vector<1x128xf32>
    %cst_16 = arith.constant dense<0.000000e+00> : vector<1xf32>
    %38 = vector.multi_reduction <add>, %37, %cst_16 [1] : vector<1x128xf32> to vector<1xf32>
    %39 = vector.shape_cast %38 : vector<1xf32> to vector<1x1xf32>
    %40 = tpu.reciprocal %39 : vector<1x1xf32> -> vector<1x1xf32>
    %41 = vector.broadcast %40 : vector<1x1xf32> to vector<1x128xf32>
    %42 = arith.mulf %37, %41 : vector<1x128xf32>
    %43 = arith.addf %27, %42 : vector<1x128xf32>
    %c0_17 = arith.constant 0 : index
    %c0_18 = arith.constant 0 : index
    %44 = vector.load %arg2[%c0_17, %c0_18] : memref<1x128xf32, #tpu.memory_space<vmem>>, vector<1x128xf32>
    tpu.vector_store %arg2[%c0_17, %c0_18], %43 {strides = array<i32>} : memref<1x128xf32, #tpu.memory_space<vmem>>, vector<1x128xf32>,
    return
  }
}

</mosaic_0001>

<bundles_post_ra>
// kernel: _forward_impl.1
= control target key start
LH: loop header
LB: loop body
LE: loop exit
PB: predicated region body
PF: predicated region fallthrough
CT: control target
= control target key end

     0   :  { %7 = vsyncpa [#allocation3], 0  ;;  %s388_s9 = smov [#allocation2]   ;;  %s433_s0 = inlined_call_operand.vmem [shape: f32[1,24], index: 0, kind: input, shape index: {}]   ;;  %s434_s1 = inlined_call_operand.hbm [shape: f32[32,384], index: 1, kind: input, shape index: {}]   ;;  %s435_s2 = inlined_call_operand.vmem [shape: f32[1,128], index: 2, kind: output, shape index: {}]  }
   0x1   :  { %s15_s10 = sshll.u32 %s388_s9, 4  ;;  %s364_s13 = scalar_lea.hbm %s434_s1, 1536  ;;  %s16_s10 = int_to_ptr.vmem [resolvable:$true] %s15_s10 }
   0x2   :  { %p365_p0 = scmp.ne.s32.totalorder %s434_s1, %s364_s13  ;;  %p368_p1 = scmp.lt.u32.totalorder %s364_s13, %s434_s1 }
   0x4   :  { %p370_p2 = pnand %p368_p1, %p365_p0 }
   0x6   :  { %373 = shalt.err (!%p370_p2)
}
   0x7   :  { %s374_s18 = scalar_lea.vmem %s16_s10, 1536  ;;  %p379_p4 = scmp.lt.s32.totalorder %s16_s10, %s16_s10 }
   0x8   :  { %p375_p3 = scmp.ne.s32.totalorder %s16_s10, %s374_s18  ;;  %p380_p5 = scmp.lt.s32.totalorder %s374_s18, %s374_s18 }
   0xa   :  { %p381_p6 = por %p380_p5, %p379_p4 }
   0xc   :  { %p382_p7 = pnand %p381_p6, %p375_p3 }
   0xe   :  { %385 = shalt.err (!%p382_p7)
}
   0xf   :  { %s389_s19 = smov 384   ;;  %s390_s20 = smov 24  }
  0x10   :  { %21 = dma.hbm_to_vmem [thread:$0]  %s434_s1, 1536, %s16_s10, [#allocation3], %s389_s19, %s389_s19, %s390_s20  }
  0x11   :  { %386 = dma.done.wait [#allocation3], 1536  }
  0x12   :  { %387 = vsyncadd [#allocation3], 4294965760  ;;  %v391_v0 = vmov 0.0|0.0   ;;  %vm392_vm0 = vmmov 0   ;;  %v393_v1 = vmov 0.0   ;;  %v26_v2 = vld [vmem:[#allocation2] sm:$0xff] }
  0x13   :  { %334 = vmatprep.subr.bf16.mxu0 %v391_v0  ;;  %317 = vmatprep.mubr.msk.f32.mxu0 %vm392_vm0, %v393_v1  ;;  %v27_v3 = vld [vmem:[#allocation2 + $0x18] sm:$0xff]  ;;  %v28_v5 = vld [vmem:[#allocation2 + $0x30] sm:$0xff]  ;;  %v25_v6 = vld [vmem:[%s433_s0] sm:$0x1]  ;;  %vm30_vm1 = vcmask 195584   ;;  %s394_s1 = smov 112  }
  0x14   :  { %337 = vmatprep.subr.bf16.mxu1 %v391_v0  ;;  %324 = vmatprep.mubr.msk.f32.mxu1 %vm392_vm0, %v393_v1  ;;  %v335_v4 = vpack.c.bf16 %v27_v3, %v26_v2  ;;  %v29_v7 = vld [vmem:[#allocation2 + $0x48] ss:$0 sm:$0xff]  ;;  %v123_v19 = vld [vmem:[#allocation2 + $0x20] sm:$0xff]  ;;  %s395_s0 = smov 32   ;;  %s396_s25 = smov 96   ;;  %vm128_vm2 = vcmask 130048  }
  0x15   :  { %v122_v18 = vld [vmem:[#allocation2 + $0x8] sm:$0xff]  ;;  %v202_v25 = vld [vmem:[#allocation2 + $0x10] sm:$0xff]  ;;  %v204_v33 = vld [vmem:[#allocation2 + $0x58] ss:$0 sm:$0xff]  ;;  %vm278_vm3 = vcmask 1040384  }
  0x16   :  { %336 = vmatpush3.bf16.msra.mxu0 %v335_v4  ;;  %v338_v20 = vpack.c.bf16 %v123_v19, %v122_v18  ;;  %v203_v26 = vld [vmem:[#allocation2 + $0x28] sm:$0xff]  ;;  %v124_v28 = vld [vmem:[#allocation2 + $0x50] ss:$0 sm:$0xff] }
  0x17   :  { %315 = vmatprep.subr.mxu0 %v393_v1  ;;  %v341_v27 = vpack.c.bf16 %v203_v26, %v202_v25 }
  0x18   :  { %339 = vmatpush3.bf16.msra.mxu1 %v338_v20 }
  0x19   :  { %340 = vmatprep.subr.bf16.mxu1 %v391_v0 }
  0x1a   :  { %316 = vmatpush3.msra.mxu0 %v28_v5 }
  0x1b   :  { %318 = vmatmul.mubr.msk.f32.vlgmr.msra.gmra.mrb[0].mxu0 %vm30_vm1, %v25_v6 }
  0xee   :  { %v100_v8 = vpop.f32.mrb[0].mxu0 }
  0xef   :  { %v101_v9 = vadd.f32 %v100_v8, %v29_v7  ;;  %v319_v10 = vpop.f32.mrb[1].mxu0 }
  0xf1   :  { %352 = vtanh.f32 %v101_v9  ;;  %v298_v12 = vmul.f32 -1.442695, %v101_v9 }
  0xf3   :  { %354 = vpow2.f32 %v298_v12 }
  0xfb   :  { %v353_v11 = vpop.eup %352 }
  0xfc   :  { %112 = vrot.lane.b32.xlu0 %v353_v11, %s394_s1 }
  0xfd   :  { %v355_v13 = vpop.eup %354 }
  0xfe   :  { %v107_v14 = vadd.f32 1.0, %v355_v13 }
 0x100   :  { %356 = vrcp.f32 %v107_v14 }
 0x10a   :  { %v357_v15 = vpop.eup %356 }
 0x16e   :  { %v113_v16 = vpop.permute.xlu0 %112 }
 0x16f   :  { %v115_v17 = vmul.f32 %v357_v15, %v113_v16 }
 0x171   :  { %358 = vtanh.f32 %v115_v17 }
 0x17b   :  { %v359_v21 = vpop.eup %358 }
 0x17c   :  { %118 = vrot.lane.b32.xlu0 %v359_v21, %s395_s0 }
 0x1ee   :  { %v119_v22 = vpop.permute.xlu0 %118 }
 0x1ef   :  { %v121_v23 = vmul.f32 %v357_v15, %v119_v22 }
 0x1f1   :  { %126 = vrot.lane.b32.xlu1 %v121_v23, %s396_s25 }
 0x263   :  { %v127_v24 = vpop.permute.xlu1 %126 }
 0x264   :  { %325 = vmatmul.mubr.msk.f32.vlgmr.msra.gmra.mrb[0].mxu1 %vm128_vm2, %v127_v24 }
 0x265   :  { %331 = vmatprep.mubr.msk.f32.mxu1 %vm392_vm0, %v393_v1  ;;  %342 = vmatpush3.bf16.msra.mxu1 %v341_v27 }
 0x337   :  { %v197_v29 = vpop.f32.mrb[0].mxu1 }
 0x338   :  { %v198_v30 = vadd.f32 %v197_v29, %v124_v28  ;;  %v326_v31 = vpop.f32.mrb[1].mxu1 }
 0x33a   :  { %v201_v32 = vmax.f32 %v198_v30, 0.0 }
 0x33c   :  { %332 = vmatmul.mubr.msk.f32.vlgmr.msra.gmra.mrb[2].mxu1 %vm128_vm2, %v201_v32 }
 0x40f   :  { %v274_v34 = vpop.f32.mrb[2].mxu1 }
 0x410   :  { %v275_v35 = vadd.f32 %v274_v34, %v204_v33  ;;  %v333_v36 = vpop.f32.mrb[3].mxu1 }
 0x412   :  { %v279_v37 = vsel %vm278_vm3, %v275_v35, -inf }
 0x413   :  { %280 = vmax.xlane.f32.xlu1 %v279_v37 }
 0x4a0   :  { %v281_v38 = vpop.xlane.xlu1 %280 }
 0x4a1   :  { %v282_v39 = vsub.f32 %v275_v35, %v281_v38 }
 0x4a3   :  { %v283_v40 = vmul.f32 1.442695, %v282_v39 }
 0x4a5   :  { %360 = vpow2.f32 %v283_v40 }
 0x4af   :  { %v361_v41 = vpop.eup %360 }
 0x4b0   :  { %v285_v42 = vsel %vm278_vm3, %v361_v41, 0.0 }
 0x4b1   :  { %286 = vadd.xlane.f32.xlu0 %v285_v42 }
 0x53e   :  { %v287_v43 = vpop.xlane.xlu0 %286 }
 0x53f   :  { %362 = vrcp.f32 %v287_v43 }
 0x549   :  { %v363_v44 = vpop.eup %362 }
 0x54a   :  { %v289_v45 = vmul.f32 %v363_v44, %v361_v41 }
 0x54c   :  { %v290_v46 = vadd.f32 %v289_v45, %v201_v32 }
 0x54e   :  { %291 = vst [vmem:[%s435_s2] sm:$0x1] %v290_v46 }
 0x54f   :  { %296 = vsyncpa [#allocation3], 1 }

</bundles_post_ra>
